<compile_context>
chip_gen: v7x
topology: tpu7x:2x2x1
jax: 0.10.0
libtpu: 0.0.40
codegen_flags: <defaults>
</compile_context>

<pallas_src>
import math
import jax
import jax.numpy as jnp
from jax.experimental import pallas as pl
from jax.experimental.pallas import tpu as pltpu


def _make_gat_kernel(num_heads, f_out, row_block, num_row_blocks,
                     use_skip_proj, agg_dtype):
    def kernel(*refs):
        if use_skip_proj:
            x_ref, mask_ref, w_ref, a_ref, skip_ref, bias_ref, out_ref = refs
        else:
            x_ref, mask_ref, w_ref, a_ref, bias_ref, out_ref = refs

        h, fo = num_heads, f_out

        x_all = x_ref[...]                                   # (N, F_in)  f32
        w = w_ref[...]                                       # (F_in, H*F_out)

        # Wide projection of ALL nodes (needed for target scores + aggregation).
        proj = jnp.dot(x_all, w, preferred_element_type=jnp.float32)      # (N, HF)

        # All-head source/target scores with ONE MXU matmul against the
        # block-diagonal scoring matrix A (HF, 2H): columns 0..H-1 are the
        # per-head source scores, columns H..2H-1 the target scores.
        st_all = jnp.dot(proj, a_ref[...], preferred_element_type=jnp.float32)  # (N, 2H)
        s_tgt_t = st_all[:, h:].T                            # (H, N): one small transpose

        if num_row_blocks == 1:
            # Single row block: the query rows are all rows; no extra work.
            x_q, proj_q, st_q = x_all, proj, st_all
        else:
            # TODO(synk): with many row blocks, hoist the full projection /
            # target scores out of the per-block body (flash-style KV tiling)
            # instead of recomputing them each block.
            row0 = pl.multiple_of(pl.program_id(0) * row_block, row_block)
            x_q = x_ref[pl.ds(row0, row_block), :]           # (Nq, F_in)
            proj_q = jnp.dot(x_q, w, preferred_element_type=jnp.float32)
            st_q = jnp.dot(proj_q, a_ref[...], preferred_element_type=jnp.float32)
        s_src_q = st_q[:, :h].T                              # (H, Nq)

        # Softmax statistics batched over heads on one (H, Nq, N) slab:
        # LeakyReLU(0.2), additive mask, stable exp, row max / row sum are each
        # traced once instead of H unrolled copies.
        scores = s_src_q[:, :, None] + s_tgt_t[:, None, :]   # (H, Nq, N)
        scores = jnp.where(scores >= 0.0, scores, 0.2 * scores)
        logits = scores + mask_ref[...].astype(jnp.float32)[None, :, :]
        m = jnp.max(logits, axis=-1, keepdims=True)
        p = jnp.exp(logits - m)                              # unnormalized attention
        # Row max is itself a logit, so p holds a 1.0 per row and denom >= 1.
        denom = jnp.sum(p, axis=-1, keepdims=True)           # (H, Nq, 1)
        inv = 1.0 / denom                                    # exact divide, tiny array

        # Skip connection + bias, computed once for all heads (lane-dense slab).
        if use_skip_proj:
            base = jnp.dot(x_q, skip_ref[...], preferred_element_type=jnp.float32)
        else:
            base = jnp.tile(x_q, (1, h))                     # identity skip per head
        base = base + bias_ref[...]                          # (Nq, H*F_out)

        # Aggregation stays per head on the MXU; f32 operands at small N
        # (bf16 only pays off once these matmuls are throughput-bound).
        p_c = p.astype(agg_dtype)
        proj_c = proj.astype(agg_dtype)
        head_outs = []
        for hh in range(h):                                  # unrolled, H is small
            agg = jnp.dot(p_c[hh], proj_c[:, hh * fo:(hh + 1) * fo],
                          preferred_element_type=jnp.float32)  # (Nq, F_out)
            head_outs.append(agg * inv[hh])
        out = jnp.concatenate(head_outs, axis=-1) + base     # (Nq, H*F_out)

        # ELU (alpha=1); clamp the exp argument so the unselected branch is finite.
        out_ref[...] = jnp.where(out > 0.0, out,
                                 jnp.exp(jnp.minimum(out, 0.0)) - 1.0)

    return kernel


def gat_layer_imp1(x, connectivity_mask, proj_param, scoring_src, scoring_tgt,
                   skip_w, bias):
    """Forward of GATLayerImp1 (concat=True, bias=True, skip=True, ELU, eval-mode)."""
    N, F_in = x.shape
    H, _, F_out = proj_param.shape
    HF = H * F_out

    # (H, F_in, F_out) -> (F_in, H*F_out): column block h == head h's weights.
    w_all = jnp.transpose(proj_param, (1, 0, 2)).reshape(F_in, HF)

    # Block-diagonal scoring matrix (HF, 2H) so proj @ A == [s_src | s_tgt].
    eye = jnp.eye(H, dtype=x.dtype)
    a_src_bd = (scoring_src.reshape(H, F_out)[:, :, None] * eye[:, None, :]
                ).reshape(HF, H)
    a_tgt_bd = (scoring_tgt.reshape(H, F_out)[:, :, None] * eye[:, None, :]
                ).reshape(HF, H)
    a_mat = jnp.concatenate([a_src_bd, a_tgt_bd], axis=1)    # (HF, 2H)

    bias_row = bias.reshape(1, HF)

    # The only O(N^2) input travels as bf16 (lossless in effect for 0 / -1e9).
    mask_bf16 = connectivity_mask.astype(jnp.bfloat16)

    use_skip_proj = (F_out != F_in)
    agg_dtype = jnp.bfloat16 if N >= 512 else jnp.float32

    # Query-row grid marked "parallel": one step at toy N, shards row blocks
    # across both v7x TensorCores when N grows.
    row_block = N if N <= 128 else 128
    assert N % row_block == 0, "pad N to a multiple of 128 before row tiling"
    num_row_blocks = N // row_block

    inputs = [x, mask_bf16, w_all, a_mat]
    in_specs = [
        pl.BlockSpec((N, F_in), lambda i: (0, 0)),           # x (all nodes)
        pl.BlockSpec((row_block, N), lambda i: (i, 0)),      # additive mask rows
        pl.BlockSpec((F_in, HF), lambda i: (0, 0)),          # projection weights
        pl.BlockSpec((HF, 2 * H), lambda i: (0, 0)),         # block-diag scoring
    ]
    if use_skip_proj:
        # nn.Linear weight (H*F_out, F_in): y = x @ W.T -> pass W.T once.
        inputs.append(jnp.transpose(skip_w))
        in_specs.append(pl.BlockSpec((F_in, HF), lambda i: (0, 0)))
    inputs.append(bias_row)
    in_specs.append(pl.BlockSpec((1, HF), lambda i: (0, 0)))

    out = pl.pallas_call(
        _make_gat_kernel(H, F_out, row_block, num_row_blocks, use_skip_proj,
                         agg_dtype),
        out_shape=jax.ShapeDtypeStruct((N, HF), jnp.float32),
        grid=(num_row_blocks,),
        in_specs=in_specs,
        out_specs=pl.BlockSpec((row_block, HF), lambda i: (i, 0)),
        compiler_params=pltpu.CompilerParams(
            dimension_semantics=("parallel",)),
    )(*inputs)

    return out, connectivity_mask


def _reference(x, mask, proj_param, scoring_src, scoring_tgt, skip_w, bias):
    """Pure-JAX reference mirroring the PyTorch forward (eval mode)."""
    N, F_in = x.shape
    H, _, F_out = proj_param.shape
    proj = jnp.einsum('nf,hfo->hno', x, proj_param)
    s_src = jnp.einsum('hno,hop->hnp', proj, scoring_src)
    s_tgt = jnp.einsum('hno,hop->hnp', proj, scoring_tgt)
    scores = s_src + jnp.transpose(s_tgt, (0, 2, 1))
    scores = jnp.where(scores >= 0, scores, 0.2 * scores)
    attn = jax.nn.softmax(scores + mask[None], axis=-1)
    out = jnp.einsum('hnm,hmo->hno', attn, proj)
    out = jnp.transpose(out, (1, 0, 2))                      # (N, H, F_out)
    if F_out == F_in:
        out = out + x[:, None, :]
    else:
        out = out + (x @ skip_w.T).reshape(N, H, F_out)
    out = out.reshape(N, H * F_out) + bias
    return jnp.where(out > 0, out, jnp.exp(out) - 1.0)


def _xavier_uniform(key, shape, fan_in, fan_out, dtype=jnp.float32):
    bound = math.sqrt(6.0 / (fan_in + fan_out))
    return jax.random.uniform(key, shape, dtype, minval=-bound, maxval=bound)


if __name__ == "__main__":
    # Small shapes: N=16 nodes, F_in=12 input features, H=4 heads, F_out=8 per head.
    N, F_IN, H, F_OUT = 16, 12, 4, 8

    key = jax.random.PRNGKey(0)
    k_x, k_adj, k_p, k_s, k_t, k_skip = jax.random.split(key, 6)

    x = jax.random.normal(k_x, (N, F_IN), jnp.float32)
    adj = (jax.random.uniform(k_adj, (N, N)) < 0.4) | jnp.eye(N, dtype=bool)
    mask = jnp.where(adj, 0.0, -1e9).astype(jnp.float32)     # connectivity_mask

    # Parameters (deterministic Xavier-uniform-style init; shapes from __init__).
    proj_param = _xavier_uniform(k_p, (H, F_IN, F_OUT), F_IN * F_OUT, H * F_OUT)
    scoring_src = _xavier_uniform(k_s, (H, F_OUT, 1), F_OUT, H)
    scoring_tgt = _xavier_uniform(k_t, (H, F_OUT, 1), F_OUT, H)
    skip_w = _xavier_uniform(k_skip, (H * F_OUT, F_IN), F_IN, H * F_OUT)  # nn.Linear weight
    bias = jnp.zeros((H * F_OUT,), jnp.float32)

    out, mask_out = jax.jit(gat_layer_imp1)(
        x, mask, proj_param, scoring_src, scoring_tgt, skip_w, bias)
    jax.block_until_ready(out)

    ref = _reference(x, mask, proj_param, scoring_src, scoring_tgt, skip_w, bias)
    assert out.shape == (N, H * F_OUT), out.shape
    # The kernel no longer introduces explicit low-precision casts or approx
    # reciprocals; the tolerance only covers TPU default matmul precision
    # (possible bf16 MXU passes on either the kernel or the XLA reference side).
    assert jnp.allclose(out, ref, atol=2e-2, rtol=2e-2), "mismatch vs reference"

    print("KERNEL_OK")
</pallas_src>

<mosaic_0001>
module attributes {stable_mosaic.version = 11 : i64} {
  func.func @kernel(%arg0: i32, %arg1: memref<16x12xf32, #tpu.memory_space<vmem>>, %arg2: memref<16x16xbf16, #tpu.memory_space<vmem>>, %arg3: memref<12x32xf32, #tpu.memory_space<vmem>>, %arg4: memref<32x8xf32, #tpu.memory_space<vmem>>, %arg5: memref<12x32xf32, #tpu.memory_space<vmem>>, %arg6: memref<1x32xf32, #tpu.memory_space<vmem>>, %arg7: memref<16x32xf32, #tpu.memory_space<vmem>>) attributes {dimension_semantics = [#tpu.dimension_semantics<parallel>], iteration_bounds = array<i64: 1>, scalar_prefetch = 0 : i64, scratch_operands = 0 : i64, tpu.core_type = #tpu.core_type<tc>, window_params = [{pipeline_mode = #tpu.pipeline_mode<synchronous>, transform_indices = @transform_0, window_bounds = array<i64: 16, 12>}, {transform_indices = @transform_1, window_bounds = array<i64: 16, 16>}, {pipeline_mode = #tpu.pipeline_mode<synchronous>, transform_indices = @transform_2, window_bounds = array<i64: 12, 32>}, {pipeline_mode = #tpu.pipeline_mode<synchronous>, transform_indices = @transform_3, window_bounds = array<i64: 32, 8>}, {pipeline_mode = #tpu.pipeline_mode<synchronous>, transform_indices = @transform_4, window_bounds = array<i64: 12, 32>}, {pipeline_mode = #tpu.pipeline_mode<synchronous>, transform_indices = @transform_5, window_bounds = array<i64: 1, 32>}, {transform_indices = @transform_6, window_bounds = array<i64: 16, 32>}]} {
    %c0 = arith.constant 0 : index
    %c0_0 = arith.constant 0 : index
    %0 = vector.load %arg1[%c0, %c0_0] : memref<16x12xf32, #tpu.memory_space<vmem>>, vector<16x12xf32>
    %c0_1 = arith.constant 0 : index
    %c0_2 = arith.constant 0 : index
    %1 = vector.load %arg3[%c0_1, %c0_2] : memref<12x32xf32, #tpu.memory_space<vmem>>, vector<12x32xf32>
    %cst = arith.constant dense<0.000000e+00> : vector<16x32xf32>
    %2 = tpu.matmul %0, %1, %cst {dimension_numbers = #tpu.dot_dimension_numbers<[1], [0], [0], [1], [0, 0, 1, 1], [], []>} : vector<16x12xf32>, vector<12x32xf32>, vector<16x32xf32> -> vector<16x32xf32>
    %c0_3 = arith.constant 0 : index
    %c0_4 = arith.constant 0 : index
    %3 = vector.load %arg4[%c0_3, %c0_4] : memref<32x8xf32, #tpu.memory_space<vmem>>, vector<32x8xf32>
    %cst_5 = arith.constant dense<0.000000e+00> : vector<16x8xf32>
    %4 = tpu.matmul %2, %3, %cst_5 {dimension_numbers = #tpu.dot_dimension_numbers<[1], [0], [0], [1], [0, 0, 1, 1], [], []>} : vector<16x32xf32>, vector<32x8xf32>, vector<16x8xf32> -> vector<16x8xf32>
    %5 = vector.extract_strided_slice %4 {offsets = [0, 4], sizes = [16, 4], strides = [1, 1]} : vector<16x8xf32> to vector<16x4xf32>
    %6 = tpu.transpose %5, [1, 0] : vector<16x4xf32> -> vector<4x16xf32>
    %7 = vector.extract_strided_slice %4 {offsets = [0, 0], sizes = [16, 4], strides = [1, 1]} : vector<16x8xf32> to vector<16x4xf32>
    %8 = tpu.transpose %7, [1, 0] : vector<16x4xf32> -> vector<4x16xf32>
    %9 = vector.shape_cast %8 : vector<4x16xf32> to vector<4x16x1xf32>
    %10 = vector.shape_cast %6 : vector<4x16xf32> to vector<4x1x16xf32>
    %11 = vector.broadcast %9 : vector<4x16x1xf32> to vector<4x16x16xf32>
    %12 = vector.broadcast %10 : vector<4x1x16xf32> to vector<4x16x16xf32>
    %13 = arith.addf %11, %12 : vector<4x16x16xf32>
    %cst_6 = arith.constant 0.000000e+00 : f32
    %14 = vector.broadcast %cst_6 : f32 to vector<4x16x16xf32>
    %15 = arith.cmpf oge, %13, %14 : vector<4x16x16xf32>
    %cst_7 = arith.constant 2.000000e-01 : f32
    %16 = vector.broadcast %cst_7 : f32 to vector<4x16x16xf32>
    %17 = arith.mulf %16, %13 : vector<4x16x16xf32>
    %18 = arith.select %15, %13, %17 : vector<4x16x16xi1>, vector<4x16x16xf32>
    %c0_8 = arith.constant 0 : index
    %c0_9 = arith.constant 0 : index
    %19 = vector.load %arg2[%c0_8, %c0_9] : memref<16x16xbf16, #tpu.memory_space<vmem>>, vector<16x16xbf16>
    %20 = arith.extf %19 : vector<16x16xbf16> to vector<16x16xf32>
    %21 = vector.shape_cast %20 : vector<16x16xf32> to vector<1x16x16xf32>
    %22 = vector.broadcast %21 : vector<1x16x16xf32> to vector<4x16x16xf32>
    %23 = arith.addf %18, %22 : vector<4x16x16xf32>
    %cst_10 = arith.constant dense<0xFF800000> : vector<4x16xf32>
    %24 = vector.multi_reduction <maximumf>, %23, %cst_10 [2] : vector<4x16x16xf32> to vector<4x16xf32>
    %25 = vector.shape_cast %24 : vector<4x16xf32> to vector<4x16x1xf32>
    %26 = vector.broadcast %25 : vector<4x16x1xf32> to vector<4x16x16xf32>
    %27 = arith.subf %23, %26 : vector<4x16x16xf32>
    %28 = math.exp %27 : vector<4x16x16xf32>
    %cst_11 = arith.constant dense<0.000000e+00> : vector<4x16xf32>
    %29 = vector.multi_reduction <add>, %28, %cst_11 [2] : vector<4x16x16xf32> to vector<4x16xf32>
    %30 = vector.shape_cast %29 : vector<4x16xf32> to vector<4x16x1xf32>
    %cst_12 = arith.constant 1.000000e+00 : f32
    %31 = vector.broadcast %cst_12 : f32 to vector<4x16x1xf32>
    %32 = arith.divf %31, %30 : vector<4x16x1xf32>
    %c0_13 = arith.constant 0 : index
    %c0_14 = arith.constant 0 : index
    %33 = vector.load %arg5[%c0_13, %c0_14] : memref<12x32xf32, #tpu.memory_space<vmem>>, vector<12x32xf32>
    %cst_15 = arith.constant dense<0.000000e+00> : vector<16x32xf32>
    %34 = tpu.matmul %0, %33, %cst_15 {dimension_numbers = #tpu.dot_dimension_numbers<[1], [0], [0], [1], [0, 0, 1, 1], [], []>} : vector<16x12xf32>, vector<12x32xf32>, vector<16x32xf32> -> vector<16x32xf32>
    %c0_16 = arith.constant 0 : index
    %c0_17 = arith.constant 0 : index
    %35 = vector.load %arg6[%c0_16, %c0_17] : memref<1x32xf32, #tpu.memory_space<vmem>>, vector<1x32xf32>
    %36 = vector.broadcast %35 : vector<1x32xf32> to vector<16x32xf32>
    %37 = arith.addf %34, %36 : vector<16x32xf32>
    %38 = vector.extract_strided_slice %28 {offsets = [0, 0, 0], sizes = [1, 16, 16], strides = [1, 1, 1]} : vector<4x16x16xf32> to vector<1x16x16xf32>
    %39 = vector.shape_cast %38 : vector<1x16x16xf32> to vector<16x16xf32>
    %40 = vector.extract_strided_slice %2 {offsets = [0, 0], sizes = [16, 8], strides = [1, 1]} : vector<16x32xf32> to vector<16x8xf32>
    %cst_18 = arith.constant dense<0.000000e+00> : vector<16x8xf32>
    %41 = tpu.matmul %39, %40, %cst_18 {dimension_numbers = #tpu.dot_dimension_numbers<[1], [0], [0], [1], [0, 0, 1, 1], [], []>} : vector<16x16xf32>, vector<16x8xf32>, vector<16x8xf32> -> vector<16x8xf32>
    %42 = vector.extract_strided_slice %32 {offsets = [0, 0, 0], sizes = [1, 16, 1], strides = [1, 1, 1]} : vector<4x16x1xf32> to vector<1x16x1xf32>
    %43 = vector.shape_cast %42 : vector<1x16x1xf32> to vector<16x1xf32>
    %44 = vector.broadcast %43 : vector<16x1xf32> to vector<16x8xf32>
    %45 = arith.mulf %41, %44 : vector<16x8xf32>
    %46 = vector.extract_strided_slice %28 {offsets = [1, 0, 0], sizes = [1, 16, 16], strides = [1, 1, 1]} : vector<4x16x16xf32> to vector<1x16x16xf32>
    %47 = vector.shape_cast %46 : vector<1x16x16xf32> to vector<16x16xf32>
    %48 = vector.extract_strided_slice %2 {offsets = [0, 8], sizes = [16, 8], strides = [1, 1]} : vector<16x32xf32> to vector<16x8xf32>
    %cst_19 = arith.constant dense<0.000000e+00> : vector<16x8xf32>
    %49 = tpu.matmul %47, %48, %cst_19 {dimension_numbers = #tpu.dot_dimension_numbers<[1], [0], [0], [1], [0, 0, 1, 1], [], []>} : vector<16x16xf32>, vector<16x8xf32>, vector<16x8xf32> -> vector<16x8xf32>
    %50 = vector.extract_strided_slice %32 {offsets = [1, 0, 0], sizes = [1, 16, 1], strides = [1, 1, 1]} : vector<4x16x1xf32> to vector<1x16x1xf32>
    %51 = vector.shape_cast %50 : vector<1x16x1xf32> to vector<16x1xf32>
    %52 = vector.broadcast %51 : vector<16x1xf32> to vector<16x8xf32>
    %53 = arith.mulf %49, %52 : vector<16x8xf32>
    %54 = vector.extract_strided_slice %28 {offsets = [2, 0, 0], sizes = [1, 16, 16], strides = [1, 1, 1]} : vector<4x16x16xf32> to vector<1x16x16xf32>
    %55 = vector.shape_cast %54 : vector<1x16x16xf32> to vector<16x16xf32>
    %56 = vector.extract_strided_slice %2 {offsets = [0, 16], sizes = [16, 8], strides = [1, 1]} : vector<16x32xf32> to vector<16x8xf32>
    %cst_20 = arith.constant dense<0.000000e+00> : vector<16x8xf32>
    %57 = tpu.matmul %55, %56, %cst_20 {dimension_numbers = #tpu.dot_dimension_numbers<[1], [0], [0], [1], [0, 0, 1, 1], [], []>} : vector<16x16xf32>, vector<16x8xf32>, vector<16x8xf32> -> vector<16x8xf32>
    %58 = vector.extract_strided_slice %32 {offsets = [2, 0, 0], sizes = [1, 16, 1], strides = [1, 1, 1]} : vector<4x16x1xf32> to vector<1x16x1xf32>
    %59 = vector.shape_cast %58 : vector<1x16x1xf32> to vector<16x1xf32>
    %60 = vector.broadcast %59 : vector<16x1xf32> to vector<16x8xf32>
    %61 = arith.mulf %57, %60 : vector<16x8xf32>
    %62 = vector.extract_strided_slice %28 {offsets = [3, 0, 0], sizes = [1, 16, 16], strides = [1, 1, 1]} : vector<4x16x16xf32> to vector<1x16x16xf32>
    %63 = vector.shape_cast %62 : vector<1x16x16xf32> to vector<16x16xf32>
    %64 = vector.extract_strided_slice %2 {offsets = [0, 24], sizes = [16, 8], strides = [1, 1]} : vector<16x32xf32> to vector<16x8xf32>
    %cst_21 = arith.constant dense<0.000000e+00> : vector<16x8xf32>
    %65 = tpu.matmul %63, %64, %cst_21 {dimension_numbers = #tpu.dot_dimension_numbers<[1], [0], [0], [1], [0, 0, 1, 1], [], []>} : vector<16x16xf32>, vector<16x8xf32>, vector<16x8xf32> -> vector<16x8xf32>
    %66 = vector.extract_strided_slice %32 {offsets = [3, 0, 0], sizes = [1, 16, 1], strides = [1, 1, 1]} : vector<4x16x1xf32> to vector<1x16x1xf32>
    %67 = vector.shape_cast %66 : vector<1x16x1xf32> to vector<16x1xf32>
    %68 = vector.broadcast %67 : vector<16x1xf32> to vector<16x8xf32>
    %69 = arith.mulf %65, %68 : vector<16x8xf32>
    %70 = tpu.concatenate %45, %53, %61, %69 in 1 : vector<16x8xf32>, vector<16x8xf32>, vector<16x8xf32>, vector<16x8xf32> -> vector<16x32xf32>
    %71 = arith.addf %70, %37 : vector<16x32xf32>
    %cst_22 = arith.constant 0.000000e+00 : f32
    %72 = vector.broadcast %cst_22 : f32 to vector<16x32xf32>
    %73 = arith.cmpf ogt, %71, %72 : vector<16x32xf32>
    %cst_23 = arith.constant 0.000000e+00 : f32
    %74 = vector.broadcast %cst_23 : f32 to vector<16x32xf32>
    %75 = arith.minimumf %71, %74 : vector<16x32xf32>
    %76 = math.exp %75 : vector<16x32xf32>
    %cst_24 = arith.constant 1.000000e+00 : f32
    %77 = vector.broadcast %cst_24 : f32 to vector<16x32xf32>
    %78 = arith.subf %76, %77 : vector<16x32xf32>
    %79 = arith.select %73, %71, %78 : vector<16x32xi1>, vector<16x32xf32>
    %c0_25 = arith.constant 0 : index
    %c0_26 = arith.constant 0 : index
    %80 = vector.load %arg7[%c0_25, %c0_26] : memref<16x32xf32, #tpu.memory_space<vmem>>, vector<16x32xf32>
    tpu.vector_store %arg7[%c0_25, %c0_26], %79 {strides = array<i32>} : memref<16x32xf32, #tpu.memory_space<vmem>>, vector<16x32xf32>,
    return
  }
  func.func @transform_0(%arg0: i32) -> (i32, i32) {
    %c0_i32 = arith.constant 0 : i32
    %c0_i32_0 = arith.constant 0 : i32
    %c0_i32_1 = arith.constant 0 : i32
    return %c0_i32, %c0_i32_0 : i32, i32
  }
  func.func @transform_1(%arg0: i32) -> (i32, i32) {
    %c0_i32 = arith.constant 0 : i32
    %c0_i32_0 = arith.constant 0 : i32
    return %arg0, %c0_i32 : i32, i32
  }
  func.func @transform_2(%arg0: i32) -> (i32, i32) {
    %c0_i32 = arith.constant 0 : i32
    %c0_i32_0 = arith.constant 0 : i32
    %c0_i32_1 = arith.constant 0 : i32
    return %c0_i32, %c0_i32_0 : i32, i32
  }
  func.func @transform_3(%arg0: i32) -> (i32, i32) {
    %c0_i32 = arith.constant 0 : i32
    %c0_i32_0 = arith.constant 0 : i32
    %c0_i32_1 = arith.constant 0 : i32
    return %c0_i32, %c0_i32_0 : i32, i32
  }
  func.func @transform_4(%arg0: i32) -> (i32, i32) {
    %c0_i32 = arith.constant 0 : i32
    %c0_i32_0 = arith.constant 0 : i32
    %c0_i32_1 = arith.constant 0 : i32
    return %c0_i32, %c0_i32_0 : i32, i32
  }
  func.func @transform_5(%arg0: i32) -> (i32, i32) {
    %c0_i32 = arith.constant 0 : i32
    %c0_i32_0 = arith.constant 0 : i32
    %c0_i32_1 = arith.constant 0 : i32
    return %c0_i32, %c0_i32_0 : i32, i32
  }
  func.func @transform_6(%arg0: i32) -> (i32, i32) {
    %c0_i32 = arith.constant 0 : i32
    %c0_i32_0 = arith.constant 0 : i32
    return %arg0, %c0_i32 : i32, i32
  }
}

</mosaic_0001>

<bundles_post_ra>
// kernel: gat_layer_imp1.1
= control target key start
LH: loop header
LB: loop body
LE: loop exit
PB: predicated region body
PF: predicated region fallthrough
CT: control target
= control target key end

     0   :  { %vm35_vm0 = vcmask 1043456   ;;  %vm1224_vm1 = vmmov 1   ;;  %vm28_vm3 = vcmask 97280   ;;  %s1379_s0 = inlined_call_operand.vmem [shape: f32[16,12], index: 0, kind: input, shape index: {}]   ;;  %s1380_s1 = inlined_call_operand.vmem [shape: bf16[16,16], index: 1, kind: input, shape index: {}]   ;;  %s1381_s2 = inlined_call_operand.vmem [shape: f32[12,32], index: 2, kind: input, shape index: {}]   ;;  %s1382_s3 = inlined_call_operand.vmem [shape: f32[32,8], index: 3, kind: input, shape index: {}]   ;;  %s1383_s4 = inlined_call_operand.vmem [shape: f32[12,32], index: 4, kind: input, shape index: {}]   ;;  %s1384_s5 = inlined_call_operand.vmem [shape: f32[1,32], index: 5, kind: input, shape index: {}]   ;;  %s1385_s6 = inlined_call_operand.hbm [shape: f32[16,32], index: 6, kind: output, shape index: {}]  }
   0x1   :  { %v26_v0 = vld [vmem:[%s1381_s2] sm:$0xff]  ;;  %v27_v1 = vld [vmem:[%s1381_s2 + $0x8] sm:$0xf]  ;;  %vm1279_vm2 = vmpackc.low %vm35_vm0, %vm1224_vm1 }
   0x2   :  { %v24_v2 = vld [vmem:[%s1379_s0] sm:$0xff]  ;;  %v1101_v3 = vpack.c.bf16 %v27_v1, %v26_v0  ;;  %v115_v6 = vld [vmem:[%s1382_s3 + $0x8] sm:$0xff]  ;;  %v116_v7 = vld [vmem:[%s1382_s3 + $0x10] sm:$0xff] }
   0x3   :  { %v114_v5 = vld [vmem:[%s1382_s3] sm:$0xff]  ;;  %1052 = vmatprep.mubr.msk.f32.mxu0 %vm28_vm3, %v24_v2  ;;  %v117_v8 = vld [vmem:[%s1382_s3 + $0x18] sm:$0xff] }
   0x4   :  { %1103 = vmatprep.subr.msk.bf16.mxu0 %vm1279_vm2, %v1101_v3  ;;  %v1107_v9 = vpack.c.bf16 %v115_v6, %v114_v5  ;;  %v1111_v10 = vpack.c.bf16 %v117_v8, %v116_v7 }
   0x5   :  { %11 = vsyncpa [#allocation3], 0  ;;  %1106 = vmatpush3.bf16.msk.msra.mxu0 %vm1279_vm2, %v1101_v3  ;;  %v25_v11 = vld [vmem:[%s1379_s0 + $0x8] sm:$0xff]  ;;  %v494_v12 = vld [vmem:[%s1383_s4] sm:$0xff]  ;;  %vm118_vm4 = vcmask 261120   ;;  %s1225_s0 = smov 124   ;;  %v272_v21 = vlaneseq }
   0x6   :  { %1108 = vmatprep.subr.bf16.mxu1 %v1107_v9  ;;  %v495_v13 = vld [vmem:[%s1383_s4 + $0x8] sm:$0xf]  ;;  %s1226_s4 = smov 120   ;;  %v1227_v44 = vmov 1966171168   ;;  %v1015_v57 = vld [vmem:[%s1380_s1] sm:$0xff]  }
   0x7   :  { %1110 = vmatpush3.bf16.msra.mxu1 %v1107_v9  ;;  %v1115_v14 = vpack.c.bf16 %v495_v13, %v494_v12  ;;  %v273_v22 = vshrl.u32 %v272_v21, 7  ;;  %v318_v45 = vunpack.c.l.s4 %v1227_v44  ;;  %v1017_v62 = vunpack.c.h.bf16 %v1015_v57  ;;  %s1228_s1 = smov 112   ;;  %s1229_s17 = smov 104  }
   0x8   :  { %1053 = vmatmul.mubr.msk.f32.vlgmr.msra.gmra.mrb[0].mxu0 %vm28_vm3, %v25_v11  ;;  %1112 = vmatprep.subr.bf16.mxu1 %v1111_v10  ;;  %v1016_v63 = vunpack.c.l.bf16 %v1015_v57  ;;  %vm405_vm5 = vcmask 130048   ;;  %s1230_s18 = smov 8   ;;  %s1231_s19 = smov 16   ;;  %vm955_vm14 = vcmask 64512   ;;  %vm960_vm15 = vcmask 195584  }
   0x9   :  { %1070 = vmatprep.mubr.msk.f32.mxu0 %vm28_vm3, %v24_v2  ;;  %1117 = vmatprep.subr.msk.bf16.mxu0 %vm1279_vm2, %v1115_v14  ;;  %v1320_v23 = vsub.s32 0, %v273_v22  ;;  %v285_v26 = vsub.s32 1, %v273_v22  ;;  %v296_v28 = vsub.s32 2, %v273_v22  ;;  %v307_v30 = vsub.s32 3, %v273_v22  ;;  %s1232_s20 = smov 24  }
   0xa   :  { %1120 = vmatpush3.bf16.msk.msra.mxu0 %vm1279_vm2, %v1115_v14  ;;  %v319_v47 = vunpack.c.0.s8 %v318_v45 }
   0xb   :  { %1114 = vmatpush3.bf16.msra.mxu1 %v1111_v10 }
   0xc   :  { %v322_v49 = vsub.s32 %v319_v47, %v273_v22 }
   0xd   :  { %1071 = vmatmul.mubr.msk.f32.vlgmr.msra.gmra.mrb[2].mxu0 %vm28_vm3, %v25_v11 }
  0xdb   :  { %v1054_v15 = vpop.f32.mrb[0].mxu0 }
  0xdc   :  { %v105_v16 = vpop.f32.mrb[1].mxu0 }
  0xdd   :  { %1063 = vmatprep.mubr.msk.f32.mxu1 %vm118_vm4, %v105_v16  ;;  %v1121_v17 = vpack.c.bf16 %v1054_v15, %v105_v16  ;;  %v1317_v18 = vpack.i.bf16 %v1054_v15, %v105_v16 }
  0xde   :  { %1064 = vmatmul.mubr.msk.f32.vlgmr.msra.gmra.mrb[0].mxu1 %vm118_vm4, %v1054_v15 }
  0xdf   :  { %1122 = vmatprep.subr.bf16.mxu0 %v1121_v17 }
  0xe0   :  { %1124 = vmatpush3.bf16.msra.mxu0 %v1121_v17 }
 0x1b1   :  { %v1065_v19 = vpop.f32.mrb[0].mxu1 }
 0x1b2   :  { %204 = vrot.lane.b32.xlu0 %v1065_v19, %s1225_s0  ;;  %v191_v20 = vpop.f32.mrb[1].mxu1 }
 0x1b3   :  { %240 = vxpose.xlu1.b32.start [1/2] (short) (narrow) %v191_v20, 8 }
 0x1b6   :  { %202 = vrot.lane.b32.xlu0 %v191_v20, %s1225_s0 }
 0x1b7   :  { %241 = vxpose.xlu1.b32.end [2/2] (short) (narrow) %v1065_v19, 8 }
 0x224   :  { %v205_v32 = vpop.permute.xlu0 %204 }
 0x228   :  { %v203_v33 = vpop.permute.xlu0 %202 }
 0x233   :  { %v256_v24 = vpop.trf.xlu1 }
 0x234   :  { %v275_v25 = vrot.slane %v256_v24, %v1320_v23  ;;  %v286_v27 = vrot.slane %v256_v24, %v285_v26  ;;  %v297_v29 = vrot.slane %v256_v24, %v296_v28  ;;  %v308_v31 = vrot.slane %v256_v24, %v307_v30 }
 0x236   :  { %281 = vbcast.lane.b32.xlu1 %v275_v25, 264  ;;  %277 = vbcast.lane.b32.xlu0 %v275_v25, 256 }
 0x23a   :  { %1150 = vrot.lane.b32.xlu1 %v1317_v18, %s1226_s4  ;;  %288 = vbcast.lane.b32.xlu0 %v286_v27, 256 }
 0x23e   :  { %292 = vbcast.lane.b32.xlu0 %v286_v27, 264 }
 0x242   :  { %299 = vbcast.lane.b32.xlu0 %v297_v29, 256 }
 0x246   :  { %303 = vbcast.lane.b32.xlu0 %v297_v29, 264 }
 0x24a   :  { %310 = vbcast.lane.b32.xlu0 %v308_v31, 256 }
 0x24e   :  { %314 = vbcast.lane.b32.xlu0 %v308_v31, 264 }
 0x26c   :  { %208 = vxpose.xlu0.b32.start [1/2] (short) (narrow) %v203_v33, 8 }
 0x270   :  { %209 = vxpose.xlu0.b32.end [2/2] (short) (narrow) %v205_v32, 8 }
 0x2a8   :  { %v282_v34 = vpop.permute.xlu1 %281  ;;  %v278_v39 = vpop.permute.xlu0 %277 }
 0x2ac   :  { %v1151_v35 = vpop.permute.xlu1 %1150  ;;  %v289_v40 = vpop.permute.xlu0 %288 }
 0x2ad   :  { %v1153_v36 = vunpack.i.h.bf16 %v1151_v35  ;;  %v1152_v37 = vunpack.i.l.bf16 %v1151_v35 }
 0x2af   :  { %v1125_v38 = vpack.c.bf16 %v1153_v36, %v1152_v37 }
 0x2b0   :  { %v293_v41 = vpop.permute.xlu0 %292 }
 0x2b1   :  { %1126 = vmatprep.subr.bf16.mxu1 %v1125_v38 }
 0x2b2   :  { %1128 = vmatpush3.bf16.msra.mxu1 %v1125_v38 }
 0x2b4   :  { %v300_v42 = vpop.permute.xlu0 %299 }
 0x2b8   :  { %v304_v43 = vpop.permute.xlu0 %303 }
 0x2bc   :  { %v311_v46 = vpop.permute.xlu0 %310 }
 0x2c0   :  { %v315_v48 = vpop.permute.xlu0 %314 }
 0x2ec   :  { %v224_v50 = vpop.trf.xlu0 }
 0x2ed   :  { %v323_v51 = vrot.slane %v224_v50, %v322_v49 }
 0x2ef   :  { %v324_v52 = vcombine.high %v323_v51, %v323_v51  ;;  %v331_v53 = vrot.slane %v323_v51, %v322_v49 }
 0x2f1   :  { %v338_v54 = vrot.slane %v324_v52, %v322_v49  ;;  %v339_v55 = vcombine.high %v331_v53, %v331_v53  ;;  %v344_v56 = vrot.slane %v331_v53, %v1320_v23 }
 0x2f3   :  { %v348_v58 = vrot.slane %v338_v54, %v1320_v23  ;;  %v352_v59 = vrot.slane %v339_v55, %v1320_v23  ;;  %v361_v60 = vadd.f32 %v344_v56, %v278_v39  ;;  %v362_v61 = vadd.f32 %v344_v56, %v282_v34 }
 0x2f4   :  { %v340_v2 = vcombine.high %v338_v54, %v338_v54 }
 0x2f5   :  { %vm369_vm6 = vcmp.ge.f32.partialorder %v361_v60, 0.0  ;;  %v377_v0 = vmul.f32 0.2, %v361_v60  ;;  %v363_v1 = vadd.f32 %v348_v58, %v289_v40  ;;  %vm370_vm7 = vcmp.ge.f32.partialorder %v362_v61, 0.0 }
 0x2f6   :  { %v378_v3 = vmul.f32 0.2, %v362_v61  ;;  %v364_v4 = vadd.f32 %v348_v58, %v293_v41  ;;  %v365_v7 = vadd.f32 %v352_v59, %v300_v42  ;;  %v356_v13 = vrot.slane %v340_v2, %v1320_v23 }
 0x2f7   :  { %v385_v5 = vsel %vm369_vm6, %v361_v60, %v377_v0  ;;  %vm371_vm8 = vcmp.ge.f32.partialorder %v363_v1, 0.0  ;;  %v379_v6 = vmul.f32 0.2, %v363_v1  ;;  %v366_v20 = vadd.f32 %v352_v59, %v304_v43 }
 0x2f8   :  { %v386_v8 = vsel %vm370_vm7, %v362_v61, %v378_v3  ;;  %v397_v9 = vadd.f32 %v1016_v63, %v385_v5  ;;  %vm372_vm9 = vcmp.ge.f32.partialorder %v364_v4, 0.0  ;;  %v380_v10 = vmul.f32 0.2, %v364_v4 }
 0x2f9   :  { %v398_v11 = vadd.f32 %v1017_v62, %v386_v8  ;;  %v387_v12 = vsel %vm371_vm8, %v363_v1, %v379_v6  ;;  %v381_v19 = vmul.f32 0.2, %v365_v7  ;;  %vm373_vm10 = vcmp.ge.f32.partialorder %v365_v7, 0.0 }
 0x2fa   :  { %v406_v14 = vsel %vm405_vm5, %v397_v9, -inf  ;;  %v399_v15 = vadd.f32 %v1016_v63, %v387_v12  ;;  %v388_v17 = vsel %vm372_vm9, %v364_v4, %v380_v10  ;;  %v382_v25 = vmul.f32 0.2, %v366_v20 }
 0x2fb   :  { %v409_v16 = vsel %vm405_vm5, %v398_v11, -inf  ;;  %407 = vmax.xlane.f32.xlu1 %v406_v14  ;;  %v400_v22 = vadd.f32 %v1017_v62, %v388_v17  ;;  %v389_v24 = vsel %vm373_vm10, %v365_v7, %v381_v19  ;;  %v367_v26 = vadd.f32 %v356_v13, %v311_v46 }
 0x2fc   :  { %410 = vmax.xlane.f32.xlu0 %v409_v16  ;;  %v412_v21 = vsel %vm405_vm5, %v399_v15, -inf  ;;  %vm374_vm11 = vcmp.ge.f32.partialorder %v366_v20, 0.0  ;;  %v401_v27 = vadd.f32 %v1016_v63, %v389_v24  ;;  %v368_v30 = vadd.f32 %v356_v13, %v315_v48 }
 0x2fd   :  { %v415_v23 = vsel %vm405_vm5, %v400_v22, -inf  ;;  %v390_v28 = vsel %vm374_vm11, %v366_v20, %v382_v25  ;;  %v383_v29 = vmul.f32 0.2, %v367_v26  ;;  %vm375_vm12 = vcmp.ge.f32.partialorder %v367_v26, 0.0 }
 0x2fe   :  { %v418_v31 = vsel %vm405_vm5, %v401_v27, -inf  ;;  %v402_v32 = vadd.f32 %v1017_v62, %v390_v28  ;;  %v384_v34 = vmul.f32 0.2, %v368_v30  ;;  %vm376_vm13 = vcmp.ge.f32.partialorder %v368_v30, 0.0 }
 0x2ff   :  { %413 = vmax.xlane.f32.xlu1 %v412_v21  ;;  %v391_v33 = vsel %vm375_vm12, %v367_v26, %v383_v29  ;;  %v1072_v26 = vpop.f32.mrb[2].mxu0 }
 0x300   :  { %v421_v35 = vsel %vm405_vm5, %v402_v32, -inf  ;;  %v403_v36 = vadd.f32 %v1016_v63, %v391_v33  ;;  %v392_v37 = vsel %vm376_vm13, %v368_v30, %v384_v34 }
 0x301   :  { %v404_v39 = vadd.f32 %v1017_v62, %v392_v37 }
 0x302   :  { %v424_v38 = vsel %vm405_vm5, %v403_v36, -inf }
 0x303   :  { %416 = vmax.xlane.f32.xlu1 %v415_v23  ;;  %v427_v40 = vsel %vm405_vm5, %v404_v39, -inf  ;;  %v572_v23 = vpop.f32.mrb[3].mxu0 }
 0x307   :  { %419 = vmax.xlane.f32.xlu1 %v418_v31 }
 0x30b   :  { %422 = vmax.xlane.f32.xlu1 %v421_v35 }
 0x30f   :  { %425 = vmax.xlane.f32.xlu1 %v424_v38 }
 0x312   :  { %1155 = vrot.lane.b32.xlu0 %v1317_v18, %s1228_s1 }
 0x313   :  { %428 = vmax.xlane.f32.xlu1 %v427_v40 }
 0x324   :  { %1160 = vrot.lane.b32.xlu1 %v1317_v18, %s1229_s17 }
 0x388   :  { %v408_v41 = vpop.xlane.xlu1 %407 }
 0x389   :  { %v411_v42 = vpop.xlane.xlu0 %410  ;;  %v430_v43 = vsub.f32 %v397_v9, %v408_v41 }
 0x38a   :  { %v431_v44 = vsub.f32 %v398_v11, %v411_v42 }
 0x38b   :  { %v438_v45 = vmul.f32 1.442695, %v430_v43 }
 0x38c   :  { %v440_v46 = vmul.f32 1.442695, %v431_v44  ;;  %v414_v47 = vpop.xlane.xlu1 %413 }
 0x38d   :  { %1164 = vpow2.f32 %v438_v45  ;;  %v1156_v48 = vpop.permute.xlu0 %1155  ;;  %v432_v49 = vsub.f32 %v399_v15, %v414_v47 }
 0x38e   :  { %1166 = vpow2.f32 %v440_v46  ;;  %v1158_v50 = vunpack.i.h.bf16 %v1156_v48  ;;  %v1157_v51 = vunpack.i.l.bf16 %v1156_v48 }
 0x38f   :  { %v442_v52 = vmul.f32 1.442695, %v432_v49 }
 0x390   :  { %v1129_v53 = vpack.c.bf16 %v1158_v50, %v1157_v51  ;;  %v417_v54 = vpop.xlane.xlu1 %416 }
 0x391   :  { %1168 = vpow2.f32 %v442_v52  ;;  %v433_v55 = vsub.f32 %v400_v22, %v417_v54 }
 0x392   :  { %1130 = vmatprep.subr.bf16.mxu0 %v1129_v53 }
 0x393   :  { %v444_v18 = vmul.f32 1.442695, %v433_v55 }
 0x394   :  { %v420_v56 = vpop.xlane.xlu1 %419 }
 0x395   :  { %1170 = vpow2.f32 %v444_v18  ;;  %v434_v57 = vsub.f32 %v401_v27, %v420_v56 }
 0x397   :  { %v1165_v58 = vpop.eup %1164  ;;  %v446_v59 = vmul.f32 1.442695, %v434_v57 }
 0x398   :  { %v1167_v60 = vpop.eup %1166  ;;  %1077 = vmatprep.mubr.msk.f32.mxu0 %vm405_vm5, %v1165_v58  ;;  %v423_v61 = vpop.xlane.xlu1 %422  ;;  %v454_v12 = vsel %vm405_vm5, %v1165_v58, 0.0 }
 0x399   :  { %1172 = vpow2.f32 %v446_v59  ;;  %v435_v62 = vsub.f32 %v402_v32, %v423_v61  ;;  %1078 = vmatmul.mubr.msk.f32.vlgmr.msra.gmra.mrb[4].mxu0 %vm405_vm5, %v1167_v60  ;;  %v457_v25 = vsel %vm405_vm5, %v1167_v60, 0.0  ;;  %v1000_v59 = vld [vmem:[%s1384_s5] ss:$0 sm:$0xff]  ;;  %s1233_s5 = smov [#allocation2]  }
 0x39a   :  { %1132 = vmatpush3.bf16.msra.mxu0 %v1129_v53  ;;  %s984_s23 = sshll.u32 %s1233_s5, 4  ;;  %s985_s23 = int_to_ptr.vmem [resolvable:$true] %s984_s23 }
 0x39b   :  { %v1169_v63 = vpop.eup %1168  ;;  %v448_v0 = vmul.f32 1.442695, %v435_v62  ;;  %s1200_s24 = scalar_lea.vmem %s985_s23, 256  ;;  %p1205_p1 = scmp.lt.s32.totalorder %s985_s23, %s985_s23 }
 0x39c   :  { %1084 = vmatprep.mubr.msk.f32.mxu1 %vm405_vm5, %v1169_v63  ;;  %v426_v1 = vpop.xlane.xlu1 %425  ;;  %v460_v2 = vsel %vm405_vm5, %v1169_v63, 0.0  ;;  %p1201_p0 = scmp.ne.s32.totalorder %s985_s23, %s1200_s24  ;;  %p1206_p2 = scmp.lt.s32.totalorder %s1200_s24, %s1200_s24 }
 0x39d   :  { %1174 = vpow2.f32 %v448_v0  ;;  %v436_v3 = vsub.f32 %v403_v36, %v426_v1  ;;  %461 = vadd.xlane.f32.xlu1 %v460_v2  ;;  %v578_v0 = vadd.f32 %v1072_v26, %v1000_v59 }
 0x39e   :  { %p1207_p3 = por %p1206_p2, %p1205_p1 }
 0x39f   :  { %v1171_v4 = vpop.eup %1170  ;;  %v450_v5 = vmul.f32 1.442695, %v436_v3 }
 0x3a0   :  { %1085 = vmatmul.mubr.msk.f32.vlgmr.msra.gmra.mrb[2].mxu1 %vm405_vm5, %v1171_v4  ;;  %v429_v6 = vpop.xlane.xlu1 %428  ;;  %v463_v7 = vsel %vm405_vm5, %v1171_v4, 0.0  ;;  %v573_v4 = vadd.f32 %v1000_v59, %v572_v23  ;;  %p1208_p4 = pnand %p1207_p3, %p1201_p0 }
 0x3a1   :  { %1176 = vpow2.f32 %v450_v5  ;;  %v437_v8 = vsub.f32 %v404_v39, %v429_v6  ;;  %464 = vadd.xlane.f32.xlu0 %v463_v7 }
 0x3a3   :  { %v1173_v9 = vpop.eup %1172  ;;  %v452_v10 = vmul.f32 1.442695, %v437_v8 }
 0x3a4   :  { %1091 = vmatprep.mubr.msk.f32.mxu0 %vm405_vm5, %v1173_v9  ;;  %v1161_v11 = vpop.permute.xlu1 %1160  ;;  %v466_v13 = vsel %vm405_vm5, %v1173_v9, 0.0 }
 0x3a5   :  { %1178 = vpow2.f32 %v452_v10  ;;  %v1163_v14 = vunpack.i.h.bf16 %v1161_v11  ;;  %v1162_v15 = vunpack.i.l.bf16 %v1161_v11  ;;  %455 = vadd.xlane.f32.xlu0 %v454_v12  ;;  %467 = vadd.xlane.f32.xlu1 %v466_v13 }
 0x3a7   :  { %v1175_v16 = vpop.eup %1174  ;;  %v1133_v17 = vpack.c.bf16 %v1163_v14, %v1162_v15 }
 0x3a8   :  { %1092 = vmatmul.mubr.msk.f32.vlgmr.msra.gmra.mrb[6].mxu0 %vm405_vm5, %v1175_v16  ;;  %v469_v19 = vsel %vm405_vm5, %v1175_v16, 0.0 }
 0x3a9   :  { %470 = vadd.xlane.f32.xlu1 %v469_v19  ;;  %1134 = vmatprep.subr.bf16.mxu1 %v1133_v17 }
 0x3aa   :  { %1136 = vmatpush3.bf16.msra.mxu1 %v1133_v17 }
 0x3ab   :  { %v1177_v20 = vpop.eup %1176 }
 0x3ac   :  { %1098 = vmatprep.mubr.msk.f32.mxu1 %vm405_vm5, %v1177_v20  ;;  %v472_v21 = vsel %vm405_vm5, %v1177_v20, 0.0 }
 0x3ad   :  { %473 = vadd.xlane.f32.xlu1 %v472_v21 }
 0x3af   :  { %v1179_v22 = vpop.eup %1178 }
 0x3b0   :  { %1099 = vmatmul.mubr.msk.f32.vlgmr.msra.gmra.mrb[4].mxu1 %vm405_vm5, %v1179_v22  ;;  %v475_v24 = vsel %vm405_vm5, %v1179_v22, 0.0 }
 0x3b1   :  { %476 = vadd.xlane.f32.xlu1 %v475_v24 }
 0x3b5   :  { %458 = vadd.xlane.f32.xlu1 %v457_v25 }
 0x42a   :  { %v462_v27 = vpop.xlane.xlu1 %461 }
 0x42e   :  { %v465_v29 = vpop.xlane.xlu0 %464 }
 0x42f   :  { %1180 = vrcp.f32 %v465_v29 }
 0x430   :  { %1182 = vrcp.f32 %v462_v27 }
 0x432   :  { %v468_v28 = vpop.xlane.xlu1 %467  ;;  %v456_v54 = vpop.xlane.xlu0 %455 }
 0x436   :  { %v471_v30 = vpop.xlane.xlu1 %470 }
 0x437   :  { %1184 = vrcp.f32 %v471_v30 }
 0x438   :  { %1186 = vrcp.f32 %v468_v28 }
 0x439   :  { %v1181_v34 = vpop.eup %1180 }
 0x43a   :  { %v474_v33 = vpop.xlane.xlu1 %473  ;;  %v1183_v36 = vpop.eup %1182 }
 0x43e   :  { %v477_v40 = vpop.xlane.xlu1 %476 }
 0x43f   :  { %1188 = vrcp.f32 %v477_v40 }
 0x440   :  { %1190 = vrcp.f32 %v474_v33 }
 0x441   :  { %v1185_v41 = vpop.eup %1184 }
 0x442   :  { %v1187_v43 = vpop.eup %1186  ;;  %v459_v53 = vpop.xlane.xlu1 %458 }
 0x443   :  { %1192 = vrcp.f32 %v459_v53 }
 0x444   :  { %1194 = vrcp.f32 %v456_v54 }
 0x449   :  { %v1189_v47 = vpop.eup %1188 }
 0x44a   :  { %v1191_v49 = vpop.eup %1190 }
 0x44d   :  { %v1193_v56 = vpop.eup %1192 }
 0x44e   :  { %v1195_v58 = vpop.eup %1194 }
 0x46c   :  { %v1079_v31 = vpop.f32.mrb[4].mxu0 }
 0x46d   :  { %v653_v32 = vpop.f32.mrb[5].mxu0  ;;  %v663_v60 = vmul.f32 %v1193_v56, %v1079_v31 }
 0x46e   :  { %v662_v62 = vmul.f32 %v1195_v58, %v653_v32 }
 0x473   :  { %v1086_v35 = vpop.f32.mrb[2].mxu1 }
 0x474   :  { %v752_v37 = vmul.f32 %v1181_v34, %v1086_v35  ;;  %v742_v38 = vpop.f32.mrb[3].mxu1 }
 0x475   :  { %v751_v39 = vmul.f32 %v1183_v36, %v742_v38 }
 0x476   :  { %935 = vrot.lane.b32.xlu1 %v752_v37, %s1230_s18 }
 0x477   :  { %933 = vrot.lane.b32.xlu0 %v751_v39, %s1230_s18 }
 0x47b   :  { %v1093_v42 = vpop.f32.mrb[6].mxu0 }
 0x47c   :  { %v841_v44 = vmul.f32 %v1185_v41, %v1093_v42  ;;  %v831_v45 = vpop.f32.mrb[7].mxu0 }
 0x47d   :  { %v840_v46 = vmul.f32 %v1187_v43, %v831_v45 }
 0x47e   :  { %943 = vrot.lane.b32.xlu0 %v841_v44, %s1231_s19 }
 0x47f   :  { %941 = vrot.lane.b32.xlu1 %v840_v46, %s1231_s19 }
 0x483   :  { %v1100_v48 = vpop.f32.mrb[4].mxu1 }
 0x484   :  { %v930_v50 = vmul.f32 %v1189_v47, %v1100_v48  ;;  %v920_v51 = vpop.f32.mrb[5].mxu1 }
 0x485   :  { %v929_v52 = vmul.f32 %v1191_v49, %v920_v51 }
 0x486   :  { %951 = vrot.lane.b32.xlu0 %v930_v50, %s1232_s20 }
 0x487   :  { %949 = vrot.lane.b32.xlu1 %v929_v52, %s1232_s20 }
 0x4e8   :  { %v936_v18 = vpop.permute.xlu1 %935 }
 0x4e9   :  { %v934_v55 = vpop.permute.xlu0 %933  ;;  %v957_v63 = vsel %vm955_vm14, %v663_v60, %v936_v18 }
 0x4ea   :  { %v956_v1 = vsel %vm955_vm14, %v662_v62, %v934_v55 }
 0x4f0   :  { %v944_v57 = vpop.permute.xlu0 %943 }
 0x4f1   :  { %v942_v61 = vpop.permute.xlu1 %941  ;;  %v959_v2 = vsel %vm405_vm5, %v957_v63, %v944_v57 }
 0x4f2   :  { %v958_v5 = vsel %vm405_vm5, %v956_v1, %v942_v61 }
 0x4f8   :  { %v952_v3 = vpop.permute.xlu0 %951 }
 0x4f9   :  { %v962_v6 = vsel %vm960_vm15, %v959_v2, %v952_v3  ;;  %v950_v7 = vpop.permute.xlu1 %949 }
 0x4fa   :  { %v964_v8 = vadd.f32 %v962_v6, %v578_v0  ;;  %v961_v9 = vsel %vm960_vm15, %v958_v5, %v950_v7 }
 0x4fb   :  { %v963_v10 = vadd.f32 %v961_v9, %v573_v4 }
 0x4fc   :  { %v968_v11 = vmin.f32 %v964_v8, 0.0  ;;  %vm966_vm0 = vcmp.gt.f32.partialorder %v964_v8, 0.0 }
 0x4fd   :  { %v967_v12 = vmin.f32 %v963_v10, 0.0  ;;  %vm965_vm1 = vcmp.gt.f32.partialorder %v963_v10, 0.0 }
 0x4fe   :  { %v971_v13 = vmul.f32 1.442695, %v968_v11 }
 0x4ff   :  { %v969_v14 = vmul.f32 1.442695, %v967_v12 }
 0x500   :  { %1196 = vpow2.f32 %v971_v13 }
 0x501   :  { %1198 = vpow2.f32 %v969_v14 }
 0x50a   :  { %v1197_v15 = vpop.eup %1196 }
 0x50b   :  { %v1199_v16 = vpop.eup %1198  ;;  %v1013_v17 = vadd.f32 -1.0, %v1197_v15 }
 0x50c   :  { %v1012_v19 = vadd.f32 -1.0, %v1199_v16 }
 0x50d   :  { %v976_v20 = vsel %vm966_vm0, %v964_v8, %v1013_v17 }
 0x50e   :  { %978 = vst.msk [vmem:[#allocation2 + $0x8] sm:$0xff] %vm118_vm4, %v976_v20  ;;  %v975_v21 = vsel %vm965_vm1, %v963_v10, %v1012_v19 }
 0x50f   :  { %977 = vst.msk [vmem:[#allocation2] sm:$0xff] %vm118_vm4, %v975_v21 }
 0x510   :  { %1211 = shalt.err (!%p1208_p4)
}
 0x511   :  { %s1212_s27 = scalar_lea.hbm %s1385_s6, 256 }
 0x512   :  { %p1213_p5 = scmp.ne.s32.totalorder %s1385_s6, %s1212_s27  ;;  %p1216_p6 = scmp.lt.u32.totalorder %s1212_s27, %s1385_s6 }
 0x514   :  { %p1218_p7 = pnand %p1216_p6, %p1213_p5 }
 0x516   :  { %1221 = shalt.err (!%p1218_p7)
}
 0x517   :  { %s1234_s7 = smov 128  }
 0x518   :  { %990 = dma.vmem_to_hbm [thread:$0]  %s985_s23, 256, %s1385_s6, [#allocation3], %s1234_s7, %s1234_s7, %s1230_s18  }
 0x519   :  { %1222 = dma.done.wait [#allocation3], 256  }
 0x51a   :  { %1223 = vsyncadd [#allocation3], 4294967040 }
 0x51b   :  { %994 = vsyncpa [#allocation3], 1 }

</bundles_post_ra>
